<compile_context>
chip_gen: v7x
topology: tpu7x:2x2x1
jax: 0.10.0
libtpu: 0.0.40
codegen_flags: <defaults>
</compile_context>

<pallas_src>
import jax
import jax.numpy as jnp
from jax.experimental import pallas as pl
from jax.experimental.pallas import tpu as pltpu

LANES = 128
SUBLANES = 8
MAX_BLOCK_ROWS = 4096   # 4096 * 128 * 4 B = 2 MiB per stream buffer
MIN_GRID_STEPS = 4      # let v7x's 2 TensorCores split even modest inputs


def _zrelu_kernel(x_ref, o_ref):
    """x_ref holds interleaved [re, im, re, im, ...] float32 along lanes."""
    x = x_ref[...]
    nonneg = (x >= 0.0).astype(jnp.float32)
    # The partner component lives in the adjacent lane: even lanes (real parts)
    # pair with lane+1 (their imag part), odd lanes with lane-1.
    # pltpu.roll follows jnp.roll semantics: roll(c, s)[i] == c[(i - s) % 128],
    # so shift=127 fetches lane i+1 and shift=1 fetches lane i-1.
    from_next = pltpu.roll(nonneg, shift=LANES - 1, axis=1)  # value of lane i+1
    from_prev = pltpu.roll(nonneg, shift=1, axis=1)          # value of lane i-1
    lane = jax.lax.broadcasted_iota(jnp.int32, x.shape, 1)
    partner = jnp.where(lane % 2 == 0, from_next, from_prev)
    mask = nonneg * partner
    # Multiply (not jnp.where) so NaN components still yield NaN like torch.
    o_ref[...] = x * mask


@jax.jit
def _zrelu_complex64(x):
    orig_shape = x.shape
    n_f = 2 * x.size  # number of float32 scalars in the interleaved view

    # Interleave real/imag into one float32 stream: [re0, im0, re1, im1, ...].
    # XLA fuses real + imag + stack + reshape into a single HBM pass.
    inter = jnp.stack([jnp.real(x), jnp.imag(x)], axis=-1).reshape(-1)

    # Pad only to (SUBLANES, LANES) tile granularity (minimal padding traffic).
    rows = -(-n_f // LANES)
    rows = ((rows + SUBLANES - 1) // SUBLANES) * SUBLANES
    pad = rows * LANES - n_f
    if pad:
        inter = jnp.pad(inter, (0, pad))
    x2d = inter.reshape(rows, LANES)

    # Block size: big enough to amortize per-step overhead, small enough to fit
    # every generation's scoped-VMEM default, and capped so the grid keeps
    # >= MIN_GRID_STEPS steps for the v7x megacore split.
    rows_per_step = -(-rows // MIN_GRID_STEPS)
    rows_per_step = ((rows_per_step + SUBLANES - 1) // SUBLANES) * SUBLANES
    block_rows = max(SUBLANES, min(MAX_BLOCK_ROWS, rows_per_step))
    grid = (pl.cdiv(rows, block_rows),)

    spec = pl.BlockSpec((block_rows, LANES), lambda i: (i, 0))
    out2d = pl.pallas_call(
        _zrelu_kernel,
        out_shape=jax.ShapeDtypeStruct((rows, LANES), jnp.float32),
        grid_spec=pltpu.PrefetchScalarGridSpec(
            num_scalar_prefetch=0,
            grid=grid,
            in_specs=[spec],
            out_specs=spec,
        ),
        compiler_params=pltpu.CompilerParams(
            dimension_semantics=("parallel",),
        ),
    )(x2d)

    out_flat = out2d.reshape(-1)
    if pad:
        out_flat = out_flat[:n_f]
    pairs = out_flat.reshape(*orig_shape, 2)
    return jax.lax.complex(pairs[..., 0], pairs[..., 1])


def zrelu(x: jax.Array) -> jax.Array:
    """zReLU activation. `x` must be a complex tensor (complex64 on TPU)."""
    if not jnp.issubdtype(x.dtype, jnp.complexfloating):
        raise TypeError(f"Input must be a complex tensor. Got type {x.dtype}")
    if x.dtype != jnp.complex64:
        # TODO(synk): complex128 would need float64 VMEM tiles, which TPU/Mosaic
        # does not support; refuse rather than silently downcasting.
        raise TypeError(f"Only complex64 is supported on TPU. Got {x.dtype}")
    if x.size == 0:
        return x
    return _zrelu_complex64(x)


class ZReLU:
    """Parameter-free module wrapper mirroring the PyTorch nn.Module."""

    def __call__(self, x):
        return self.forward(x)

    def forward(self, x):
        return zrelu(x)


def _reference(x):
    mask = (jnp.real(x) >= 0) & (jnp.imag(x) >= 0)
    return x * mask.astype(x.dtype)


if __name__ == "__main__":
    key = jax.random.PRNGKey(0)
    k_re, k_im = jax.random.split(key)
    shape = (2, 4, 16, 16)  # NCHW-style complex activation
    x = (jax.random.normal(k_re, shape, dtype=jnp.float32)
         + 1j * jax.random.normal(k_im, shape, dtype=jnp.float32)
         ).astype(jnp.complex64)

    mod = ZReLU()
    out = jax.block_until_ready(mod(x))

    ref = _reference(x)
    assert out.shape == x.shape and out.dtype == x.dtype
    assert jnp.allclose(out, ref, atol=1e-6, rtol=1e-6)

    print("KERNEL_OK")
</pallas_src>

<mosaic_0001>
module attributes {stable_mosaic.version = 11 : i64} {
  func.func @_zrelu_kernel(%arg0: i32, %arg1: memref<8x128xf32, #tpu.memory_space<vmem>>, %arg2: memref<8x128xf32, #tpu.memory_space<vmem>>) attributes {dimension_semantics = [#tpu.dimension_semantics<parallel>], iteration_bounds = array<i64: 4>, scalar_prefetch = 0 : i64, scratch_operands = 0 : i64, tpu.core_type = #tpu.core_type<tc>, window_params = [{transform_indices = @transform_0, window_bounds = array<i64: 8, 128>}, {transform_indices = @transform_1, window_bounds = array<i64: 8, 128>}]} {
    %c0 = arith.constant 0 : index
    %c0_0 = arith.constant 0 : index
    %0 = vector.load %arg1[%c0, %c0_0] : memref<8x128xf32, #tpu.memory_space<vmem>>, vector<8x128xf32>
    %cst = arith.constant 0.000000e+00 : f32
    %1 = vector.broadcast %cst : f32 to vector<8x128xf32>
    %2 = arith.cmpf oge, %0, %1 : vector<8x128xf32>
    %3 = arith.extui %2 : vector<8x128xi1> to vector<8x128xi32>
    %4 = arith.sitofp %3 : vector<8x128xi32> to vector<8x128xf32>
    %c127_i32 = arith.constant 127 : i32
    %5 = tpu.dynamic_rotate %4 by %c127_i32 dim 1 : vector<8x128xf32>, i32 -> vector<8x128xf32>
    %c1_i32 = arith.constant 1 : i32
    %6 = tpu.dynamic_rotate %4 by %c1_i32 dim 1 : vector<8x128xf32>, i32 -> vector<8x128xf32>
    %7 = tpu.iota {dimensions = array<i32: 1>} : vector<8x128xi32>
    %c2_i32 = arith.constant 2 : i32
    %c0_i32 = arith.constant 0 : i32
    %8 = arith.cmpi eq, %c2_i32, %c0_i32 : i32
    %c1_i32_1 = arith.constant 1 : i32
    %9 = arith.select %8, %c1_i32_1, %c2_i32 : i32
    %10 = vector.broadcast %9 : i32 to vector<8x128xi32>
    %11 = arith.remsi %7, %10 : vector<8x128xi32>
    %c0_i32_2 = arith.constant 0 : i32
    %12 = vector.broadcast %c0_i32_2 : i32 to vector<8x128xi32>
    %13 = arith.cmpi ne, %11, %12 : vector<8x128xi32>
    %c0_i32_3 = arith.constant 0 : i32
    %14 = vector.broadcast %c0_i32_3 : i32 to vector<8x128xi32>
    %15 = arith.cmpi slt, %11, %14 : vector<8x128xi32>
    %c0_i32_4 = arith.constant 0 : i32
    %16 = arith.cmpi slt, %9, %c0_i32_4 : i32
    %17 = vector.broadcast %16 : i1 to vector<8x128xi1>
    %18 = vector.broadcast %17 : vector<8x128xi1> to vector<8x128xi1>
    %19 = arith.xori %15, %18 : vector<8x128xi1>
    %20 = arith.andi %19, %13 : vector<8x128xi1>
    %21 = vector.broadcast %9 : i32 to vector<8x128xi32>
    %22 = arith.addi %11, %21 : vector<8x128xi32>
    %23 = arith.select %20, %22, %11 : vector<8x128xi1>, vector<8x128xi32>
    %c0_i32_5 = arith.constant 0 : i32
    %24 = vector.broadcast %c0_i32_5 : i32 to vector<8x128xi32>
    %25 = arith.cmpi eq, %23, %24 : vector<8x128xi32>
    %26 = arith.select %25, %5, %6 : vector<8x128xi1>, vector<8x128xf32>
    %27 = arith.mulf %4, %26 : vector<8x128xf32>
    %28 = arith.mulf %0, %27 : vector<8x128xf32>
    %c0_6 = arith.constant 0 : index
    %c0_7 = arith.constant 0 : index
    %29 = vector.load %arg2[%c0_6, %c0_7] : memref<8x128xf32, #tpu.memory_space<vmem>>, vector<8x128xf32>
    tpu.vector_store %arg2[%c0_6, %c0_7], %28 {strides = array<i32>} : memref<8x128xf32, #tpu.memory_space<vmem>>, vector<8x128xf32>,
    return
  }
  func.func @transform_0(%arg0: i32) -> (i32, i32) {
    %c0_i32 = arith.constant 0 : i32
    %c0_i32_0 = arith.constant 0 : i32
    return %arg0, %c0_i32 : i32, i32
  }
  func.func @transform_1(%arg0: i32) -> (i32, i32) {
    %c0_i32 = arith.constant 0 : i32
    %c0_i32_0 = arith.constant 0 : i32
    return %arg0, %c0_i32 : i32, i32
  }
}

</mosaic_0001>

<bundles_post_ra>
// kernel: custom-call.1
= control target key start
LH: loop header
LB: loop body
LE: loop exit
PB: predicated region body
PF: predicated region fallthrough
CT: control target
= control target key end

     0   :  { %s59_s0 = inlined_call_operand.hbm [shape: c64[2,4,16,16], index: 0, kind: input, shape index: {}]   ;;  %s60_s1 = inlined_call_operand.vmem [shape: f32[2,4,16,16], index: 1, kind: output, shape index: {}]  }
   0x1   :  { %s2_s8 = scalar_lea.hbm %s59_s0, 2048 }
   0x2   :  { %3 = vsyncpa [#allocation0], 0  ;;  %s4_s11 = sshll.u32 %s60_s1, 4  ;;  %s34_s14 = scalar_lea.hbm %s59_s0, 4096  ;;  %s5_s11 = int_to_ptr.vmem [resolvable:$true] %s4_s11 }
   0x3   :  { %p11_p0 = scmp.ne.s32.totalorder %s2_s8, %s34_s14  ;;  %p13_p1 = scmp.lt.u32.totalorder %s2_s8, %s59_s0 }
   0x4   :  { %p14_p2 = scmp.lt.u32.totalorder %s34_s14, %s34_s14  ;;  %p16_p4 = scmp.lt.u32.totalorder %s34_s14, %s2_s8 }
   0x6   :  { %p15_p3 = por %p14_p2, %p13_p1 }
   0x8   :  { %p17_p5 = por %p16_p4, %p15_p3 }
   0xa   :  { %p18_p6 = pnand %p17_p5, %p11_p0 }
   0xc   :  { %21 = shalt.err (!%p18_p6)  }
   0xd   :  { %s22_s17 = scalar_lea.vmem %s5_s11, 2048  ;;  %p27_p8 = scmp.lt.s32.totalorder %s5_s11, %s5_s11 }
   0xe   :  { %p23_p7 = scmp.ne.s32.totalorder %s5_s11, %s22_s17  ;;  %p28_p9 = scmp.lt.s32.totalorder %s22_s17, %s22_s17 }
  0x10   :  { %p29_p10 = por %p28_p9, %p27_p8 }
  0x12   :  { %p30_p11 = pnand %p29_p10, %p23_p7 }
  0x14   :  { %33 = shalt.err (!%p30_p11)  }
  0x15   :  { %7 = dma.hbm_to_vmem [thread:$0]  %s2_s8, 2048, %s5_s11, [#allocation0] }
  0x16   :  { %35 = dma.done.wait [#allocation0], 2048  }
  0x17   :  { %36 = vsyncadd [#allocation0], 4294965248 }
  0x18   :  { %9 = vsyncpa [#allocation0], 1 }

// kernel: custom-call
= control target key start
LH: loop header
LB: loop body
LE: loop exit
PB: predicated region body
PF: predicated region fallthrough
CT: control target
= control target key end

     0   :  { %2 = vsyncpa [#allocation0], 0  ;;  %s61_s0 = inlined_call_operand.hbm [shape: c64[2,4,16,16], index: 0, kind: input, shape index: {}]   ;;  %s62_s1 = inlined_call_operand.vmem [shape: f32[2,4,16,16], index: 1, kind: output, shape index: {}]  }
   0x1   :  { %s3_s8 = sshll.u32 %s62_s1, 4  ;;  %s9_s11 = scalar_lea.hbm %s61_s0, 2048  ;;  %s4_s8 = int_to_ptr.vmem [resolvable:$true] %s3_s8 }
   0x2   :  { %p10_p0 = scmp.ne.s32.totalorder %s61_s0, %s9_s11  ;;  %s11_s16 = scalar_lea.hbm %s61_s0, 4096 }
   0x3   :  { %p12_p1 = scmp.lt.u32.totalorder %s11_s16, %s9_s11  ;;  %p13_p2 = scmp.lt.u32.totalorder %s9_s11, %s61_s0 }
   0x5   :  { %p14_p3 = por %p13_p2, %p12_p1 }
   0x7   :  { %p15_p4 = pnand %p14_p3, %p10_p0 }
   0x9   :  { %18 = shalt.err (!%p15_p4)  }
   0xa   :  { %s19_s1 = scalar_lea.vmem %s4_s8, 2048  ;;  %p24_p6 = scmp.lt.s32.totalorder %s4_s8, %s4_s8 }
   0xb   :  { %p20_p5 = scmp.ne.s32.totalorder %s4_s8, %s19_s1  ;;  %p25_p7 = scmp.lt.s32.totalorder %s19_s1, %s19_s1 }
   0xd   :  { %p26_p8 = por %p25_p7, %p24_p6 }
   0xf   :  { %p27_p9 = pnand %p26_p8, %p20_p5 }
  0x11   :  { %30 = shalt.err (!%p27_p9)  }
  0x12   :  { %6 = dma.hbm_to_vmem [thread:$0]  %s61_s0, 2048, %s4_s8, [#allocation0] }
  0x13   :  { %31 = dma.done.wait [#allocation0], 2048  }
  0x14   :  { %32 = vsyncadd [#allocation0], 4294965248 }
  0x15   :  { %8 = vsyncpa [#allocation0], 1 }

// kernel: _zrelu_complex64.1
= control target key start
LH: loop header
LB: loop body
LE: loop exit
PB: predicated region body
PF: predicated region fallthrough
CT: control target
= control target key end

     0   :  { %s234_s6 = smov 0   ;;  %s251_s0 = inlined_call_operand.vmem [shape: f32[32,128], index: 0, kind: input, shape index: {}]   ;;  %s252_s1 = inlined_call_operand.vmem [shape: f32[32,128], index: 1, kind: output, shape index: {}]  }
   0x1 LB: > { %s192_s7 = sadd.s32 4294967295, %s219_s6   ;;  %p196_p0 = scmp.ge.s32.totalorder %s219_s6, 1  ;;  %s219_s6 = sphi %s234_s6, %s11_s6  }
   0x2   : > { %p86_p1 = scmp.lt.s32.totalorder %s219_s6, 5 }
   0x4   : > { %p87_p2 = pnand %p196_p0, %p86_p1 }
   0x5   : > { %p104_p3 = scmp.lt.s32.totalorder (!%p87_p2), %s192_s7, 3  ;;  %v221_v1 = vmov (!%p87_p2), 0.0   ;;  %s222_s12 = smov (!%p87_p2), 127   ;;  %v120_v3 = vlaneseq (!%p87_p2) }
   0x6   : > { %90 = sbr.rel (%p87_p2) target bundleno = 144 (0x90), region = 24  ;;  %s223_s13 = smov (!%p87_p2), 1  }
   0x7   : > { %v121_v4 = vand.u32 (!%p87_p2), 127, %v120_v3 }
   0x9   : > { %v126_v5 = vand.u32 (!%p87_p2), 1, %v121_v4 }
   0xb   : > { %vm134_vm1 = vcmp.eq.s32.totalorder (!%p87_p2), %v126_v5, 0 }
   0xd   : > { %s254_s7 = smov (!%p104_p3, %s192_s7), 3 }
   0xe   : > { %s197_s8 = sshll.u32 %s254_s7, 3 }
   0xf   : > { %s107_s11 = scalar_lea.vmem %s251_s0, %s197_s8  ;;  %s111_s16 = scalar_lea.vmem %s252_s1, %s197_s8 }
  0x10   : > { %v112_v0 = vld [vmem:[%s107_s11] sm:$0xff] }
  0x11   : > { %vm113_vm0 = vcmp.ge.f32.partialorder %v112_v0, 0.0 }
  0x12   : > { %v199_v2 = vsel %vm113_vm0, 1.0, %v221_v1 }
  0x13   : > { %116 = vrot.lane.b32.xlu0 %v199_v2, %s222_s12 }
  0x17   : > { %118 = vrot.lane.b32.xlu0 %v199_v2, %s223_s13 }
  0x85   : > { %v117_v6 = vpop.permute.xlu0 %116 }
  0x89   : > { %v119_v7 = vpop.permute.xlu0 %118 }
  0x8a   : > { %v135_v8 = vsel %vm134_vm1, %v117_v6, %v119_v7 }
  0x8b   : > { %v136_v9 = vmul.f32 %v199_v2, %v135_v8 }
  0x8d   : > { %v137_v10 = vmul.f32 %v136_v9, %v112_v0 }
  0x8f   : > { %138 = vst [vmem:[%s111_s16] sm:$0xff] %v137_v10 }
  0x90 PF: > { %s11_s6 = sadd.s32 1, %s219_s6  }
  0x91   : > { %p8_p4 = scmp.ge.s32.totalorder %s11_s6, 6  }
  0x93   :  { %10 = sbr.rel (!%p8_p4) target bundleno = 1 (0x1), region = 54 }

// kernel: custom-call.2
= control target key start
LH: loop header
LB: loop body
LE: loop exit
PB: predicated region body
PF: predicated region fallthrough
CT: control target
= control target key end

     0   :  { %s126_s0 = inlined_call_operand.vmem [shape: f32[2,4,16,16], index: 0, kind: input, shape index: {}]   ;;  %s127_s1 = inlined_call_operand.vmem [shape: f32[2,4,16,16], index: 1, kind: input, shape index: {}]   ;;  %s128_s2 = inlined_call_operand.hbm [shape: c64[2,4,16,16], index: 2, kind: output, shape index: {}]  }
   0x1   :  { %s87_s11 = scalar_lea.hbm %s128_s2, 2048 }
   0x2   :  { %4 = vsyncpa [#allocation0], 0  ;;  %s5_s14 = sshll.u32 %s126_s0, 4  ;;  %s6_s14 = int_to_ptr.vmem [resolvable:$true] %s5_s14 }
   0x3   :  { %s18_s15 = scalar_lea.vmem %s6_s14, 2048  ;;  %p23_p1 = scmp.lt.s32.totalorder %s6_s14, %s6_s14 }
   0x4   :  { %p19_p0 = scmp.ne.s32.totalorder %s6_s14, %s18_s15  ;;  %p24_p2 = scmp.lt.s32.totalorder %s18_s15, %s18_s15 }
   0x6   :  { %p25_p3 = por %p24_p2, %p23_p1 }
   0x8   :  { %p26_p4 = pnand %p25_p3, %p19_p0 }
   0xa   :  { %29 = shalt.err (!%p26_p4)  }
   0xb   :  { %p31_p5 = scmp.ne.s32.totalorder %s128_s2, %s87_s11  ;;  %s32_s0 = scalar_lea.hbm %s128_s2, 4096 }
   0xc   :  { %p33_p6 = scmp.lt.u32.totalorder %s32_s0, %s87_s11  ;;  %p34_p7 = scmp.lt.u32.totalorder %s87_s11, %s128_s2 }
   0xe   :  { %p35_p8 = por %p34_p7, %p33_p6 }
  0x10   :  { %p36_p9 = pnand %p35_p8, %p31_p5 }
  0x12   :  { %39 = shalt.err (!%p36_p9)  }
  0x13   :  { %8 = dma.vmem_to_hbm [thread:$0]  %s6_s14, 2048, %s128_s2, [#allocation0] }
  0x14   :  { %65 = dma.done.wait [#allocation0], 2048  }
  0x15   :  { %66 = vsyncadd [#allocation0], 4294965248 }
  0x16   :  { %10 = vsyncpa [#allocation0], 1 }
  0x17   :  { %11 = vsyncpa [#allocation1], 0  ;;  %s12_s28 = sshll.u32 %s127_s1, 4  ;;  %s13_s28 = int_to_ptr.vmem [resolvable:$true] %s12_s28 }
  0x18   :  { %s40_s29 = scalar_lea.vmem %s13_s28, 2048  ;;  %p45_p11 = scmp.lt.s32.totalorder %s13_s28, %s13_s28 }
  0x19   :  { %p41_p10 = scmp.ne.s32.totalorder %s13_s28, %s40_s29  ;;  %p46_p12 = scmp.lt.s32.totalorder %s40_s29, %s40_s29 }
  0x1b   :  { %p47_p13 = por %p46_p12, %p45_p11 }
  0x1d   :  { %p48_p0 = pnand %p47_p13, %p41_p10 }
  0x1f   :  { %51 = shalt.err (!%p48_p0)  }
  0x20   :  { %p53_p1 = scmp.ne.s32.totalorder %s87_s11, %s32_s0  ;;  %p56_p2 = scmp.lt.u32.totalorder %s32_s0, %s32_s0 }
  0x22   :  { %p57_p3 = por %p56_p2, %p34_p7 }
  0x24   :  { %p59_p4 = por %p57_p3, %p33_p6 }
  0x26   :  { %p60_p5 = pnand %p59_p4, %p53_p1 }
  0x28   :  { %63 = shalt.err (!%p60_p5)  }
  0x29   :  { %15 = dma.vmem_to_hbm [thread:$0]  %s13_s28, 2048, %s87_s11, [#allocation1] }
  0x2a   :  { %67 = dma.done.wait [#allocation1], 2048  }
  0x2b   :  { %68 = vsyncadd [#allocation1], 4294965248 }
  0x2c   :  { %17 = vsyncpa [#allocation1], 1 }

</bundles_post_ra>
